<compile_context>
chip_gen: v6e
topology: v6e:2x2x1
jax: 0.10.0
libtpu: 0.0.40
codegen_flags: <defaults>
</compile_context>

<pallas_src>
import functools

import jax
import jax.numpy as jnp
from jax.experimental import pallas as pl
from jax.experimental.pallas import tpu as pltpu


_SLAB_LANES = 128


def _round_up(x, m):
    return -(-x // m) * m


# -----------------------------------------------------------------------------
# Parameter-slab layout: (row, lane, nrows, ncols) per weight block.
# Narrow matrices are co-located side-by-side in lanes; row starts are
# 16-aligned so the same layout works for f32 (8,128) and bf16 (16,128) tiles.
# -----------------------------------------------------------------------------
def _slab_layout(W, F, H):
    n, WF, F2 = 2 * F * W, W * F, 2 * F
    assert n <= _SLAB_LANES, "packing assumes 2*F*W <= 128 (feats <= 6 at n_window=10)"
    assert 4 * H + 2 * F2 + F <= _SLAB_LANES
    layout = {
        "wd1a": (0, 0 * H, n, H),            # (n, H)
        "wd2a": (0, 1 * H, n, H),            # (n, H)
        "we1s": (0, 2 * H, WF, H),           # (W*F, H)  src half of first encoder Linear
        "we1c": (0, 3 * H, WF, H),           # (W*F, H)  c   half of first encoder Linear
        "wd1b": (0, 4 * H, H, F2),           # (H, 2F)
        "wd2b": (0, 4 * H + F2, H, F2),      # (H, 2F)
        "wf":   (0, 4 * H + 2 * F2, H, F),   # (2F, F)
        "we2":  (_round_up(n, 16), 0, H, n), # (H, n)
    }
    total_rows = _round_up(_round_up(n, 16) + H, 16)
    return layout, total_rows


def pack_params(params, W, F, H=8, weight_dtype=jnp.bfloat16):
    """Pack weights into one lane-co-located (rows, 128) slab (weight_dtype) and
    the 7 biases into a tiny (8, 128) f32 block."""
    layout, total = _slab_layout(W, F, H)
    WF = W * F

    # Split the first encoder Linear (n = 2*F*W rows) into src rows / c rows,
    # matching the (w, [src_f | c_f]) layout of PyTorch's cat+permute+flatten.
    we1_3d = params["we1"].reshape(W, 2 * F, H)
    blocks = {
        "we1s": we1_3d[:, :F, :].reshape(WF, H),
        "we1c": we1_3d[:, F:, :].reshape(WF, H),
        "we2": params["we2"],
        "wd1a": params["wd1a"],
        "wd2a": params["wd2a"],
        "wd1b": params["wd1b"],
        "wd2b": params["wd2b"],
        "wf": params["wf"],
    }
    slab = jnp.zeros((total, _SLAB_LANES), weight_dtype)
    for name, a in blocks.items():
        r, l, nr, nc = layout[name]
        assert a.shape == (nr, nc)
        slab = slab.at[r:r + nr, l:l + nc].set(a.astype(weight_dtype))

    bias = jnp.zeros((8, _SLAB_LANES), jnp.float32)
    for i, name in enumerate(["be1", "be2", "bd1a", "bd1b", "bd2a", "bd2b", "bf"]):
        b = params[name].astype(jnp.float32)
        bias = bias.at[i, :b.shape[0]].set(b)
    return slab, bias


# -----------------------------------------------------------------------------
# Kernel
# -----------------------------------------------------------------------------
def _make_kernel(W, F, H, layout):
    n, F2 = 2 * F * W, 2 * F

    def kernel(src_ref, wslab_ref, bias_ref, out_ref):
        f32 = jnp.float32
        srcf = src_ref[...]                                   # (bt, W*F) f32

        def wblk(name):                                       # static slab slice (cheap)
            r, l, nr, nc = layout[name]
            return wslab_ref[r:r + nr, l:l + nc]

        def mm(a, w):                                         # MXU dot, f32 accumulate
            return jnp.dot(a.astype(w.dtype), w, preferred_element_type=f32)

        we1s, we1c, we2 = wblk("we1s"), wblk("we1c"), wblk("we2")
        wd1a, wd1b = wblk("wd1a"), wblk("wd1b")
        wd2a, wd2b = wblk("wd2a"), wblk("wd2b")
        wf = wblk("wf")

        be1 = bias_ref[0:1, :H]
        be2 = bias_ref[1:2, :n]
        bd1a = bias_ref[2:3, :H]
        bd1b = bias_ref[3:4, :F2]
        bd2a = bias_ref[4:5, :H]
        bd2b = bias_ref[5:6, :F2]
        bf = bias_ref[6:7, :F]

        # ---- encode #1 (c == 0 => only the "src half" of the first Linear).
        pre_src = mm(srcf, we1s) + be1                        # reused by encode #2
        h1 = jnp.maximum(pre_src, 0.0)
        enc1 = jnp.maximum(mm(h1, we2) + be2, 0.0)            # (bt, n)

        # ---- decoder1 + fcn
        d1 = jnp.maximum(mm(enc1, wd1a) + bd1a, 0.0)
        d1 = jnp.maximum(mm(d1, wd1b) + bd1b, 0.0)            # (bt, 2F)
        x1 = jax.nn.sigmoid(mm(d1, wf) + bf)                  # (bt, F)

        # ---- c = (x1 - src)**2, broadcast over windows (lane tile, no MXU), f32.
        cflat = (jnp.tile(x1, (1, W)) - srcf) ** 2            # (bt, W*F)

        # ---- encode #2 (reuse pre_src; only the c half is new)
        h2 = jnp.maximum(pre_src + mm(cflat, we1c), 0.0)
        enc2 = jnp.maximum(mm(h2, we2) + be2, 0.0)            # (bt, n)

        # ---- decoder2 + fcn
        d2 = jnp.maximum(mm(enc2, wd2a) + bd2a, 0.0)
        d2 = jnp.maximum(mm(d2, wd2b) + bd2b, 0.0)            # (bt, 2F)
        x2 = jax.nn.sigmoid(mm(d2, wf) + bf)                  # (bt, F)

        out_ref[0] = x1.astype(out_ref.dtype)
        out_ref[1] = x2.astype(out_ref.dtype)

    return kernel


# -----------------------------------------------------------------------------
# Wrapper
# -----------------------------------------------------------------------------
def tranad_transformer_forward(src, tgt, wslab, bias, n_hidden=8, batch_tile=256):
    """src, tgt: (W, B, F) float32 (tgt is unused by the PyTorch forward).
    wslab, bias = pack_params(params, W, F)."""
    del tgt
    W, B, F = src.shape
    layout, rows = _slab_layout(W, F, n_hidden)
    assert wslab.shape == (rows, _SLAB_LANES)
    assert bias.shape == (8, _SLAB_LANES) and bias.dtype == jnp.float32

    # Batch tile: multiple of 8 sublanes, capped so per-step VMEM stays small.
    bt = max(8, (min(batch_tile, _round_up(B, 8)) // 8) * 8)
    B_pad = _round_up(B, bt)

    # Layout glue: permute(1,0,2)+flatten of the src half of cat((src, c), dim=2).
    # TODO(synk): for very large B have the upstream producer emit (B, W, F)
    # directly so this extra HBM pass over src disappears.
    src_flat = jnp.transpose(src, (1, 0, 2)).reshape(B, W * F)
    if B_pad != B:
        src_flat = jnp.pad(src_flat, ((0, B_pad - B), (0, 0)))

    kernel = _make_kernel(W, F, n_hidden, layout)

    out = pl.pallas_call(
        kernel,
        out_shape=jax.ShapeDtypeStruct((2, B_pad, F), src.dtype),
        grid=(B_pad // bt,),
        in_specs=[
            pl.BlockSpec((bt, W * F), lambda i: (i, 0)),           # per-step batch tile
            pl.BlockSpec((rows, _SLAB_LANES), lambda i: (0, 0)),   # weights: VMEM-resident
            pl.BlockSpec((8, _SLAB_LANES), lambda i: (0, 0)),      # biases:  VMEM-resident
        ],
        out_specs=pl.BlockSpec((2, bt, F), lambda i: (0, i, 0)),
        compiler_params=pltpu.CompilerParams(
            dimension_semantics=("parallel",)),   # shards batch over v7x's 2 TCs
    )(src_flat, wslab, bias)

    # PyTorch returns (1, B, F) for both outputs.
    x1 = out[0, :B][None]
    x2 = out[1, :B][None]
    return x1, x2


# -----------------------------------------------------------------------------
# Init + pure-JAX reference (for correctness checking)
# -----------------------------------------------------------------------------
def init_params(key, feats, n_window=10, n_hidden=8):
    """Deterministic nn.Linear-style init (uniform +-1/sqrt(fan_in)); weights (in, out)."""
    F = feats
    n = 2 * F * n_window

    def linear(k, fan_in, fan_out):
        kw, kb = jax.random.split(k)
        bound = fan_in ** -0.5
        w = jax.random.uniform(kw, (fan_in, fan_out), jnp.float32, -bound, bound)
        b = jax.random.uniform(kb, (fan_out,), jnp.float32, -bound, bound)
        return w, b

    keys = jax.random.split(key, 7)
    we1, be1 = linear(keys[0], n, n_hidden)
    we2, be2 = linear(keys[1], n_hidden, n)
    wd1a, bd1a = linear(keys[2], n, n_hidden)
    wd1b, bd1b = linear(keys[3], n_hidden, 2 * F)
    wd2a, bd2a = linear(keys[4], n, n_hidden)
    wd2b, bd2b = linear(keys[5], n_hidden, 2 * F)
    wf, bf = linear(keys[6], 2 * F, F)
    return dict(we1=we1, be1=be1, we2=we2, be2=be2,
                wd1a=wd1a, bd1a=bd1a, wd1b=wd1b, bd1b=bd1b,
                wd2a=wd2a, bd2a=bd2a, wd2b=wd2b, bd2b=bd2b,
                wf=wf, bf=bf)


def ref_forward(src, tgt, p):
    """Pure-JAX transcription of the PyTorch forward."""
    del tgt
    W, B, F = src.shape

    def encode(s, c):
        x = jnp.concatenate([s, c], axis=2)                 # (W, B, 2F)
        x = jnp.transpose(x, (1, 0, 2)).reshape(B, -1)      # (B, 2*F*W)
        h = jnp.maximum(x @ p["we1"] + p["be1"], 0.0)
        return jnp.maximum(h @ p["we2"] + p["be2"], 0.0)

    c = jnp.zeros_like(src)
    e1 = encode(src, c)
    d1 = jnp.maximum(e1 @ p["wd1a"] + p["bd1a"], 0.0)
    d1 = jnp.maximum(d1 @ p["wd1b"] + p["bd1b"], 0.0)
    x1 = jnp.transpose(d1.reshape(-1, 1, 2 * F), (1, 0, 2))
    x1 = jax.nn.sigmoid(x1 @ p["wf"] + p["bf"])             # (1, B, F)

    c = (x1 - src) ** 2
    e2 = encode(src, c)
    d2 = jnp.maximum(e2 @ p["wd2a"] + p["bd2a"], 0.0)
    d2 = jnp.maximum(d2 @ p["wd2b"] + p["bd2b"], 0.0)
    x2 = jnp.transpose(d2.reshape(-1, 1, 2 * F), (1, 0, 2))
    x2 = jax.nn.sigmoid(x2 @ p["wf"] + p["bf"])             # (1, B, F)
    return x1, x2


if __name__ == "__main__":
    # feats=4, n_window fixed at 10 by the module, batch=20 (pads to 24 with
    # batch_tile=8, exercising the multi-step grid + resident slab + padding).
    F, B, W = 4, 20, 10
    key = jax.random.PRNGKey(0)
    kp, ks, kt = jax.random.split(key, 3)
    params = init_params(kp, F, n_window=W)
    src = jax.random.uniform(ks, (W, B, F), jnp.float32)
    tgt = jax.random.uniform(kt, (W, B, F), jnp.float32)
    r1, r2 = ref_forward(src, tgt, params)

    # Check both the f32 and the bf16 (default) weight-slab packings.
    for wdtype, tol in ((jnp.float32, 1e-2), (jnp.bfloat16, 3e-2)):
        wslab, bias = pack_params(params, W, F, H=8, weight_dtype=wdtype)
        fwd = jax.jit(functools.partial(tranad_transformer_forward,
                                        wslab=wslab, bias=bias, batch_tile=8))
        x1, x2 = fwd(src, tgt)
        jax.block_until_ready((x1, x2))
        assert x1.shape == (1, B, F) and x2.shape == (1, B, F)
        assert jnp.allclose(x1, r1, atol=tol, rtol=tol), f"x1 mismatch ({wdtype})"
        assert jnp.allclose(x2, r2, atol=tol, rtol=tol), f"x2 mismatch ({wdtype})"
    print("KERNEL_OK")
</pallas_src>

<mosaic_0001>
module attributes {stable_mosaic.version = 11 : i64} {
  func.func @kernel(%arg0: i32, %arg1: memref<8x40xf32, #tpu.memory_space<vmem>>, %arg2: memref<96x128xf32, #tpu.memory_space<vmem>>, %arg3: memref<8x128xf32, #tpu.memory_space<vmem>>, %arg4: memref<2x8x4xf32, #tpu.memory_space<vmem>>) attributes {dimension_semantics = [#tpu.dimension_semantics<parallel>], iteration_bounds = array<i64: 3>, scalar_prefetch = 0 : i64, scratch_operands = 0 : i64, tpu.core_type = #tpu.core_type<tc>, window_params = [{transform_indices = @transform_0, window_bounds = array<i64: 8, 40>}, {pipeline_mode = #tpu.pipeline_mode<synchronous>, transform_indices = @transform_1, window_bounds = array<i64: 96, 128>}, {pipeline_mode = #tpu.pipeline_mode<synchronous>, transform_indices = @transform_2, window_bounds = array<i64: 8, 128>}, {transform_indices = @transform_3, window_bounds = array<i64: 2, 8, 4>}]} {
    %c0 = arith.constant 0 : index
    %c0_0 = arith.constant 0 : index
    %0 = vector.load %arg1[%c0, %c0_0] : memref<8x40xf32, #tpu.memory_space<vmem>>, vector<8x40xf32>
    %c0_1 = arith.constant 0 : index
    %c16 = arith.constant 16 : index
    %1 = vector.load %arg2[%c0_1, %c16] : memref<96x128xf32, #tpu.memory_space<vmem>>, vector<40x8xf32>
    %c0_2 = arith.constant 0 : index
    %c24 = arith.constant 24 : index
    %2 = vector.load %arg2[%c0_2, %c24] : memref<96x128xf32, #tpu.memory_space<vmem>>, vector<40x8xf32>
    %c80 = arith.constant 80 : index
    %c0_3 = arith.constant 0 : index
    %3 = vector.load %arg2[%c80, %c0_3] : memref<96x128xf32, #tpu.memory_space<vmem>>, vector<8x80xf32>
    %c0_4 = arith.constant 0 : index
    %c0_5 = arith.constant 0 : index
    %4 = vector.load %arg2[%c0_4, %c0_5] : memref<96x128xf32, #tpu.memory_space<vmem>>, vector<80x8xf32>
    %c0_6 = arith.constant 0 : index
    %c32 = arith.constant 32 : index
    %5 = vector.load %arg2[%c0_6, %c32] : memref<96x128xf32, #tpu.memory_space<vmem>>, vector<8x8xf32>
    %c0_7 = arith.constant 0 : index
    %c8 = arith.constant 8 : index
    %6 = vector.load %arg2[%c0_7, %c8] : memref<96x128xf32, #tpu.memory_space<vmem>>, vector<80x8xf32>
    %c0_8 = arith.constant 0 : index
    %c40 = arith.constant 40 : index
    %7 = vector.load %arg2[%c0_8, %c40] : memref<96x128xf32, #tpu.memory_space<vmem>>, vector<8x8xf32>
    %c0_9 = arith.constant 0 : index
    %c48 = arith.constant 48 : index
    %8 = vector.load %arg2[%c0_9, %c48] : memref<96x128xf32, #tpu.memory_space<vmem>>, vector<8x4xf32>
    %c0_10 = arith.constant 0 : index
    %c0_11 = arith.constant 0 : index
    %9 = vector.load %arg3[%c0_10, %c0_11] : memref<8x128xf32, #tpu.memory_space<vmem>>, vector<1x8xf32>
    %c1 = arith.constant 1 : index
    %c0_12 = arith.constant 0 : index
    %10 = vector.load %arg3[%c1, %c0_12] : memref<8x128xf32, #tpu.memory_space<vmem>>, vector<1x80xf32>
    %c2 = arith.constant 2 : index
    %c0_13 = arith.constant 0 : index
    %11 = vector.load %arg3[%c2, %c0_13] : memref<8x128xf32, #tpu.memory_space<vmem>>, vector<1x8xf32>
    %c3 = arith.constant 3 : index
    %c0_14 = arith.constant 0 : index
    %12 = vector.load %arg3[%c3, %c0_14] : memref<8x128xf32, #tpu.memory_space<vmem>>, vector<1x8xf32>
    %c4 = arith.constant 4 : index
    %c0_15 = arith.constant 0 : index
    %13 = vector.load %arg3[%c4, %c0_15] : memref<8x128xf32, #tpu.memory_space<vmem>>, vector<1x8xf32>
    %c5 = arith.constant 5 : index
    %c0_16 = arith.constant 0 : index
    %14 = vector.load %arg3[%c5, %c0_16] : memref<8x128xf32, #tpu.memory_space<vmem>>, vector<1x8xf32>
    %c6 = arith.constant 6 : index
    %c0_17 = arith.constant 0 : index
    %15 = vector.load %arg3[%c6, %c0_17] : memref<8x128xf32, #tpu.memory_space<vmem>>, vector<1x4xf32>
    %cst = arith.constant dense<0.000000e+00> : vector<8x8xf32>
    %16 = tpu.matmul %0, %1, %cst {dimension_numbers = #tpu.dot_dimension_numbers<[1], [0], [0], [1], [0, 0, 1, 1], [], []>} : vector<8x40xf32>, vector<40x8xf32>, vector<8x8xf32> -> vector<8x8xf32>
    %17 = vector.broadcast %9 : vector<1x8xf32> to vector<8x8xf32>
    %18 = arith.addf %16, %17 : vector<8x8xf32>
    %cst_18 = arith.constant 0.000000e+00 : f32
    %19 = vector.broadcast %cst_18 : f32 to vector<8x8xf32>
    %20 = arith.maximumf %18, %19 : vector<8x8xf32>
    %cst_19 = arith.constant dense<0.000000e+00> : vector<8x80xf32>
    %21 = tpu.matmul %20, %3, %cst_19 {dimension_numbers = #tpu.dot_dimension_numbers<[1], [0], [0], [1], [0, 0, 1, 1], [], []>} : vector<8x8xf32>, vector<8x80xf32>, vector<8x80xf32> -> vector<8x80xf32>
    %22 = vector.broadcast %10 : vector<1x80xf32> to vector<8x80xf32>
    %23 = arith.addf %21, %22 : vector<8x80xf32>
    %cst_20 = arith.constant 0.000000e+00 : f32
    %24 = vector.broadcast %cst_20 : f32 to vector<8x80xf32>
    %25 = arith.maximumf %23, %24 : vector<8x80xf32>
    %cst_21 = arith.constant dense<0.000000e+00> : vector<8x8xf32>
    %26 = tpu.matmul %25, %4, %cst_21 {dimension_numbers = #tpu.dot_dimension_numbers<[1], [0], [0], [1], [0, 0, 1, 1], [], []>} : vector<8x80xf32>, vector<80x8xf32>, vector<8x8xf32> -> vector<8x8xf32>
    %27 = vector.broadcast %11 : vector<1x8xf32> to vector<8x8xf32>
    %28 = arith.addf %26, %27 : vector<8x8xf32>
    %cst_22 = arith.constant 0.000000e+00 : f32
    %29 = vector.broadcast %cst_22 : f32 to vector<8x8xf32>
    %30 = arith.maximumf %28, %29 : vector<8x8xf32>
    %cst_23 = arith.constant dense<0.000000e+00> : vector<8x8xf32>
    %31 = tpu.matmul %30, %5, %cst_23 {dimension_numbers = #tpu.dot_dimension_numbers<[1], [0], [0], [1], [0, 0, 1, 1], [], []>} : vector<8x8xf32>, vector<8x8xf32>, vector<8x8xf32> -> vector<8x8xf32>
    %32 = vector.broadcast %12 : vector<1x8xf32> to vector<8x8xf32>
    %33 = arith.addf %31, %32 : vector<8x8xf32>
    %cst_24 = arith.constant 0.000000e+00 : f32
    %34 = vector.broadcast %cst_24 : f32 to vector<8x8xf32>
    %35 = arith.maximumf %33, %34 : vector<8x8xf32>
    %cst_25 = arith.constant dense<0.000000e+00> : vector<8x4xf32>
    %36 = tpu.matmul %35, %8, %cst_25 {dimension_numbers = #tpu.dot_dimension_numbers<[1], [0], [0], [1], [0, 0, 1, 1], [], []>} : vector<8x8xf32>, vector<8x4xf32>, vector<8x4xf32> -> vector<8x4xf32>
    %37 = vector.broadcast %15 : vector<1x4xf32> to vector<8x4xf32>
    %38 = arith.addf %36, %37 : vector<8x4xf32>
    %39 = arith.negf %38 : vector<8x4xf32>
    %40 = math.exp %39 : vector<8x4xf32>
    %cst_26 = arith.constant 1.000000e+00 : f32
    %41 = vector.broadcast %cst_26 : f32 to vector<8x4xf32>
    %42 = arith.addf %41, %40 : vector<8x4xf32>
    %43 = arith.divf %41, %42 : vector<8x4xf32>
    %44 = tpu.concatenate %43, %43, %43, %43, %43, %43, %43, %43, %43, %43 in 1 : vector<8x4xf32>, vector<8x4xf32>, vector<8x4xf32>, vector<8x4xf32>, vector<8x4xf32>, vector<8x4xf32>, vector<8x4xf32>, vector<8x4xf32>, vector<8x4xf32>, vector<8x4xf32> -> vector<8x40xf32>
    %45 = arith.subf %44, %0 : vector<8x40xf32>
    %46 = arith.mulf %45, %45 : vector<8x40xf32>
    %cst_27 = arith.constant dense<0.000000e+00> : vector<8x8xf32>
    %47 = tpu.matmul %46, %2, %cst_27 {dimension_numbers = #tpu.dot_dimension_numbers<[1], [0], [0], [1], [0, 0, 1, 1], [], []>} : vector<8x40xf32>, vector<40x8xf32>, vector<8x8xf32> -> vector<8x8xf32>
    %48 = arith.addf %18, %47 : vector<8x8xf32>
    %cst_28 = arith.constant 0.000000e+00 : f32
    %49 = vector.broadcast %cst_28 : f32 to vector<8x8xf32>
    %50 = arith.maximumf %48, %49 : vector<8x8xf32>
    %cst_29 = arith.constant dense<0.000000e+00> : vector<8x80xf32>
    %51 = tpu.matmul %50, %3, %cst_29 {dimension_numbers = #tpu.dot_dimension_numbers<[1], [0], [0], [1], [0, 0, 1, 1], [], []>} : vector<8x8xf32>, vector<8x80xf32>, vector<8x80xf32> -> vector<8x80xf32>
    %52 = vector.broadcast %10 : vector<1x80xf32> to vector<8x80xf32>
    %53 = arith.addf %51, %52 : vector<8x80xf32>
    %cst_30 = arith.constant 0.000000e+00 : f32
    %54 = vector.broadcast %cst_30 : f32 to vector<8x80xf32>
    %55 = arith.maximumf %53, %54 : vector<8x80xf32>
    %cst_31 = arith.constant dense<0.000000e+00> : vector<8x8xf32>
    %56 = tpu.matmul %55, %6, %cst_31 {dimension_numbers = #tpu.dot_dimension_numbers<[1], [0], [0], [1], [0, 0, 1, 1], [], []>} : vector<8x80xf32>, vector<80x8xf32>, vector<8x8xf32> -> vector<8x8xf32>
    %57 = vector.broadcast %13 : vector<1x8xf32> to vector<8x8xf32>
    %58 = arith.addf %56, %57 : vector<8x8xf32>
    %cst_32 = arith.constant 0.000000e+00 : f32
    %59 = vector.broadcast %cst_32 : f32 to vector<8x8xf32>
    %60 = arith.maximumf %58, %59 : vector<8x8xf32>
    %cst_33 = arith.constant dense<0.000000e+00> : vector<8x8xf32>
    %61 = tpu.matmul %60, %7, %cst_33 {dimension_numbers = #tpu.dot_dimension_numbers<[1], [0], [0], [1], [0, 0, 1, 1], [], []>} : vector<8x8xf32>, vector<8x8xf32>, vector<8x8xf32> -> vector<8x8xf32>
    %62 = vector.broadcast %14 : vector<1x8xf32> to vector<8x8xf32>
    %63 = arith.addf %61, %62 : vector<8x8xf32>
    %cst_34 = arith.constant 0.000000e+00 : f32
    %64 = vector.broadcast %cst_34 : f32 to vector<8x8xf32>
    %65 = arith.maximumf %63, %64 : vector<8x8xf32>
    %cst_35 = arith.constant dense<0.000000e+00> : vector<8x4xf32>
    %66 = tpu.matmul %65, %8, %cst_35 {dimension_numbers = #tpu.dot_dimension_numbers<[1], [0], [0], [1], [0, 0, 1, 1], [], []>} : vector<8x8xf32>, vector<8x4xf32>, vector<8x4xf32> -> vector<8x4xf32>
    %67 = vector.broadcast %15 : vector<1x4xf32> to vector<8x4xf32>
    %68 = arith.addf %66, %67 : vector<8x4xf32>
    %69 = arith.negf %68 : vector<8x4xf32>
    %70 = math.exp %69 : vector<8x4xf32>
    %cst_36 = arith.constant 1.000000e+00 : f32
    %71 = vector.broadcast %cst_36 : f32 to vector<8x4xf32>
    %72 = arith.addf %71, %70 : vector<8x4xf32>
    %73 = arith.divf %71, %72 : vector<8x4xf32>
    %c0_37 = arith.constant 0 : index
    %c0_38 = arith.constant 0 : index
    %c0_39 = arith.constant 0 : index
    %74 = vector.load %arg4[%c0_37, %c0_38, %c0_39] : memref<2x8x4xf32, #tpu.memory_space<vmem>>, vector<1x8x4xf32>
    %75 = vector.shape_cast %74 : vector<1x8x4xf32> to vector<8x4xf32>
    %76 = vector.shape_cast %43 : vector<8x4xf32> to vector<1x8x4xf32>
    tpu.vector_store %arg4[%c0_37, %c0_38, %c0_39], %76 {strides = array<i32>} : memref<2x8x4xf32, #tpu.memory_space<vmem>>, vector<1x8x4xf32>,
    %c1_40 = arith.constant 1 : index
    %c0_41 = arith.constant 0 : index
    %c0_42 = arith.constant 0 : index
    %77 = vector.load %arg4[%c1_40, %c0_41, %c0_42] : memref<2x8x4xf32, #tpu.memory_space<vmem>>, vector<1x8x4xf32>
    %78 = vector.shape_cast %77 : vector<1x8x4xf32> to vector<8x4xf32>
    %79 = vector.shape_cast %73 : vector<8x4xf32> to vector<1x8x4xf32>
    tpu.vector_store %arg4[%c1_40, %c0_41, %c0_42], %79 {strides = array<i32>} : memref<2x8x4xf32, #tpu.memory_space<vmem>>, vector<1x8x4xf32>,
    return
  }
  func.func @transform_0(%arg0: i32) -> (i32, i32) {
    %c0_i32 = arith.constant 0 : i32
    %c0_i32_0 = arith.constant 0 : i32
    return %arg0, %c0_i32 : i32, i32
  }
  func.func @transform_1(%arg0: i32) -> (i32, i32) {
    %c0_i32 = arith.constant 0 : i32
    %c0_i32_0 = arith.constant 0 : i32
    %c0_i32_1 = arith.constant 0 : i32
    return %c0_i32, %c0_i32_0 : i32, i32
  }
  func.func @transform_2(%arg0: i32) -> (i32, i32) {
    %c0_i32 = arith.constant 0 : i32
    %c0_i32_0 = arith.constant 0 : i32
    %c0_i32_1 = arith.constant 0 : i32
    return %c0_i32, %c0_i32_0 : i32, i32
  }
  func.func @transform_3(%arg0: i32) -> (i32, i32, i32) {
    %c0_i32 = arith.constant 0 : i32
    %c0_i32_0 = arith.constant 0 : i32
    %c0_i32_1 = arith.constant 0 : i32
    return %c0_i32, %arg0, %c0_i32_0 : i32, i32, i32
  }
}

</mosaic_0001>

<bundles_post_ra>
// kernel: tranad_transformer_forward.1
= control target key start
LH: loop header
LB: loop body
LE: loop exit
PB: predicated region body
PF: predicated region fallthrough
CT: control target
= control target key end

     0   :  { %s1477_s12 = smov 0   ;;  %s1479_s13 = smov 0   ;;  %s1740_s0 = inlined_call_operand.vmem [shape: f32[24,40], index: 0, kind: input, shape index: {}]   ;;  %s1741_s1 = inlined_call_operand.vmem [shape: f32[96,128], index: 1, kind: input, shape index: {}]   ;;  %s1742_s2 = inlined_call_operand.vmem [shape: f32[8,128], index: 2, kind: input, shape index: {}]   ;;  %s1743_s3 = inlined_call_operand.vmem [shape: f32[2,24,4], index: 3, kind: output, shape index: {}]  }
   0x1   :  { %s1481_s14 = smov 0  }
   0x2 LB: > { %s1490_s15 = sadd.s32 4294967295, %s1438_s14   ;;  %s1492_s16 = sadd.s32 1, %s1438_s14   ;;  %s1438_s14 = sphi %s1481_s14, %s1747_s14   ;;  %s1434_s13 = sphi %s1479_s13, %s1746_s13   ;;  %s1430_s12 = sphi %s1477_s12, %s1745_s12  }
   0x3   : > { %s85_s17 = ssub.s32 %s1438_s14, %s1492_s16  ;;  %s88_s18 = sadd.s32 1, %s1434_s13 }
   0x4   : > { %p86_p0 = scmp.eq.s32.totalorder %s85_s17, 0  ;;  %p98_p1 = scmp.ne.s32.totalorder %s1434_s13, %s1430_s12 }
   0x5   : > { %p99_p2 = scmp.eq.s32.totalorder %s1490_s15, 2  ;;  %p1192_p3 = scmp.ge.s32.totalorder %s1438_s14, 1 }
   0x6   : > { %s1500_s19 = scalar_select %p86_p0, %s1434_s13, %s88_s18  }
   0x7   : > { %p1502_p4 = por %p99_p2, %p98_p1  ;;  %p136_p5 = scmp.lt.s32.totalorder %s1438_s14, 4 }
   0x9   : > { %p137_p6 = pnand %p1192_p3, %p136_p5 }
   0xa   : > { %s1440_s25 = smov (!%p137_p6), 112   ;;  %p158_p7 = scmp.lt.s32.totalorder (!%p137_p6), %s1490_s15, 2 }
   0xb   : > { %140 = sbr.rel (%p137_p6) target bundleno = 2320 (0x910), region = 32  ;;  %s1443_s30 = smov (!%p137_p6), 96  }
   0xc   : > { %s1445_s11 = smov (!%p137_p6), 104   ;;  %s155_s18 = sand.u32 (!%p137_p6), 1, %s1430_s12  }
   0xd   : > { %s1193_s21 = sshll.u32 (!%p137_p6), %s155_s18, 4  ;;  %s1446_s22 = smov (!%p137_p6), 8  }
   0xe   : > { %s1447_s23 = smov (!%p137_p6), 4   ;;  %s1660_s24 = scalar_lea.vmem (!%p137_p6), [#allocation2], %s1193_s21 }
   0xf   : > { %s1449_s26 = smov (!%p137_p6), 12   ;;  %s1450_s27 = smov (!%p137_p6), 28  }
  0x10   : > { %v1509_v0 = vld [vmem:[%s1741_s1 + $0x20] sm:$0xff]  ;;  %v1514_v1 = vld [vmem:[%s1741_s1 + $0x10] sm:$0xff]  ;;  %v1521_v2 = vld [vmem:[%s1741_s1 + $0x18] sm:$0xff]  ;;  %v1441_v4 = vmov 0.0   ;;  %vm1442_vm0 = vmmov 0   ;;  %s159_s5 = scalar_select %p158_p7, %s1490_s15, 2 }
  0x11   : > { %198 = vrot.lane.b32.xlu0 %v1509_v0, %s1440_s25  ;;  %194 = vrot.lane.b32.xlu1 %v1514_v1, %s1440_s25  ;;  %v1526_v3 = vld [vmem:[%s1741_s1 + $0x8] sm:$0xff]  ;;  %v1539_v5 = vld [vmem:[%s1741_s1] sm:$0xff]  ;;  %vm205_vm1 = vcmask 326656   ;;  %vm284_vm2 = vcmask 64512   ;;  %vm363_vm3 = vcmask 654336   ;;  %vm633_vm4 = vcmask 31744  }
  0x12   : > { %1265 = vmatprep.subr.mxu0 %v1441_v4  ;;  %1275 = vmatprep.mubr.msk.f32.mxu0 %vm1442_vm0, %v1441_v4  ;;  %s1194_s6 = sshll.u32 %s159_s5, 3  ;;  %v1561_v12 = vld [vmem:[%s1741_s1 + $0x50] sm:$0xff]  ;;  %v1195_v13 = vld [vmem:[%s1742_s2] ss:$0 sm:$0xff]  ;;  %v1574_v18 = vld [vmem:[%s1741_s1 + $0x48] sm:$0xff]  ;;  %s1451_s28 = smov 20  }
  0x13   : > { %1278 = vmatprep.subr.mxu1 %v1441_v4  ;;  %1280 = vmatprep.mubr.msk.f32.mxu1 %vm1442_vm0, %v1441_v4  ;;  %s161_s9 = scalar_lea.vmem %s1740_s0, %s1194_s6  ;;  %v1580_v19 = vld [vmem:[%s1741_s1 + $0x40] sm:$0xff]  ;;  %v1589_v20 = vld [vmem:[%s1741_s1 + $0x38] sm:$0xff]  ;;  %v1596_v21 = vld [vmem:[%s1741_s1 + $0x30] sm:$0xff]  ;;  %s1444_s6 = smov 80   ;;  %vm636_vm5 = vcmask 97280   ;;  %vm638_vm6 = vcmask 130048  }
  0x14   : > { %v1550_v11 = vld [vmem:[%s161_s9] sm:$0xff]  ;;  %1279 = vmatpush3.msra.mxu1 %v1561_v12  ;;  %v1603_v22 = vld [vmem:[%s1741_s1 + $0x28] sm:$0xff]  ;;  %s1452_s12 = smov 32   ;;  %s1453_s29 = smov 24   ;;  %vm640_vm7 = vcmask 162816   ;;  %vm642_vm8 = vcmask 195584  }
  0x15   : > { %196 = vrot.lane.b32.xlu0 %v1521_v2, %s1440_s25  ;;  %192 = vrot.lane.b32.xlu1 %v1526_v3, %s1440_s25  ;;  %v1624_v24 = vld [vmem:[%s1742_s2 + $0x1] ss:$0 sm:$0xff]  ;;  %v1199_v29 = vld [vmem:[%s1742_s2 + $0x2] ss:$0 sm:$0xff]  ;;  %vm644_vm9 = vcmask 228352   ;;  %vm646_vm10 = vcmask 261120  }
  0x16   : > { %1283 = vmatprep.subr.mxu1 %v1441_v4  ;;  %v1201_v35 = vld [vmem:[%s1742_s2 + $0x3] ss:$0 sm:$0xff]  ;;  %v1654_v40 = vld [vmem:[%s1742_s2 + $0x6] ss:$0 sm:$0xff]  ;;  %vm648_vm11 = vcmask 293888   ;;  %s1455_s4 = smov 120  }
  0x17   : > { %s1456_s5 = smov 88   ;;  %s1216_s10 = sshll.u32 (%p1502_p4), %s1490_s15, 3 }
  0x18   : > { %s1100_s17 = scalar_lea.vmem (%p1502_p4), %s1743_s3, %s1216_s10 }
  0x19   : > { %190 = vrot.lane.b32.xlu0 %v1539_v5, %s1440_s25  ;;  %442 = vrot.lane.b32.xlu1 %v1539_v5, %s1443_s30  ;;  %s1448_s25 = smov 16   ;;  %s1454_s30 = smov 36  }
  0x1d   : > { %523 = vrot.lane.b32.xlu0 %v1539_v5, %s1444_s6  ;;  %658 = vrot.lane.b32.xlu1 %v1521_v2, %s1445_s11 }
  0x21   : > { %660 = vrot.lane.b32.xlu0 %v1509_v0, %s1445_s11 }
  0x83   : > { %v199_v6 = vpop.permute.xlu0 %198  ;;  %v195_v7 = vpop.permute.xlu1 %194 }
  0x84   : > { %1266 = vmatpush3.msra.mxu0 %v199_v6 }
  0x85   : > { %1267 = vmatprep.subr.mxu0 %v1441_v4 }
  0x87   : > { %v197_v8 = vpop.permute.xlu0 %196  ;;  %v193_v9 = vpop.permute.xlu1 %192 }
  0x88   : > { %1268 = vmatpush3.msra.mxu0 %v197_v8 }
  0x89   : > { %1269 = vmatprep.subr.mxu0 %v1441_v4 }
  0x8a   : > { %1270 = vmatpush3.msra.mxu0 %v195_v7 }
  0x8b   : > { %1271 = vmatprep.subr.mxu0 %v1441_v4  ;;  %v191_v10 = vpop.permute.xlu0 %190  ;;  %v443_v23 = vpop.permute.xlu1 %442 }
  0x8c   : > { %1272 = vmatpush3.msra.mxu0 %v193_v9 }
  0x8d   : > { %1273 = vmatprep.subr.mxu0 %v1441_v4 }
  0x8e   : > { %1274 = vmatpush3.msra.mxu0 %v191_v10 }
  0x8f   : > { %1276 = vmatmul.mubr.msk.f32.vlgmr.msra.gmra.mxu0 %vm205_vm1, %v1550_v11  ;;  %1306 = vmatprep.subr.mxu0 %v1441_v4  ;;  %v1634_v34 = vpop.permute.xlu0 %523  ;;  %v659_v46 = vpop.permute.xlu1 %658 }
  0x90   : > { %1308 = vmatprep.mubr.msk.f32.mxu0 %vm1442_vm0, %v1441_v4  ;;  %1307 = vmatpush3.msra.mxu0 %v443_v23 }
  0x91   : > { %1311 = vmatprep.subr.mxu0 %v1441_v4 }
  0x93   : > { %v661_v45 = vpop.permute.xlu0 %660 }
 0x14f   : > { %v275_v14 = vpop.f32.mrf.mxu0 }
 0x150   : > { %v1568_v15 = vadd.f32 %v1195_v13, %v275_v14 }
 0x151   : > { %v1277_v16 = vpop.f32.mrf.mxu0 }
 0x152   : > { %v279_v17 = vmax.f32 %v1568_v15, 0.0 }
 0x154   : > { %1281 = vmatmul.mubr.msk.f32.vlgmr.msra.gmra.mxu1 %vm284_vm2, %v279_v17 }
 0x155   : > { %1284 = vmatpush3.msra.mxu1 %v1574_v18  ;;  %1303 = vmatprep.mubr.msk.f32.mxu1 %vm1442_vm0, %v1441_v4 }
 0x156   : > { %1285 = vmatprep.subr.mxu1 %v1441_v4 }
 0x157   : > { %1286 = vmatpush3.msra.mxu1 %v1580_v19 }
 0x158   : > { %1287 = vmatprep.subr.mxu1 %v1441_v4 }
 0x159   : > { %1288 = vmatpush3.msra.mxu1 %v1589_v20 }
 0x15a   : > { %1289 = vmatprep.subr.mxu1 %v1441_v4 }
 0x15b   : > { %1290 = vmatpush3.msra.mxu1 %v1596_v21 }
 0x15c   : > { %1291 = vmatprep.subr.mxu1 %v1441_v4 }
 0x15d   : > { %1292 = vmatpush3.msra.mxu1 %v1603_v22 }
 0x15e   : > { %1293 = vmatprep.subr.mxu1 %v1441_v4 }
 0x15f   : > { %1294 = vmatpush3.msra.mxu1 %v1509_v0 }
 0x160   : > { %1295 = vmatprep.subr.mxu1 %v1441_v4 }
 0x161   : > { %1296 = vmatpush3.msra.mxu1 %v1521_v2 }
 0x162   : > { %1297 = vmatprep.subr.mxu1 %v1441_v4 }
 0x163   : > { %1298 = vmatpush3.msra.mxu1 %v1514_v1 }
 0x164   : > { %1299 = vmatprep.subr.mxu1 %v1441_v4 }
 0x165   : > { %1300 = vmatpush3.msra.mxu1 %v1526_v3 }
 0x166   : > { %1301 = vmatprep.subr.mxu1 %v1441_v4 }
 0x167   : > { %1302 = vmatpush3.msra.mxu1 %v1539_v5 }
 0x168   : > { %1334 = vmatprep.subr.mxu1 %v1441_v4 }
 0x214   : > { %v354_v25 = vpop.f32.mrf.mxu1 }
 0x215   : > { %v355_v26 = vadd.f32 %v1624_v24, %v354_v25 }
 0x216   : > { %v1282_v27 = vpop.f32.mrf.mxu1 }
 0x217   : > { %v358_v28 = vmax.f32 %v355_v26, 0.0 }
 0x219   : > { %1304 = vmatmul.mubr.msk.f32.vlgmr.msra.gmra.mxu1 %vm363_vm3, %v358_v28 }
 0x21a   : > { %1354 = vmatprep.mubr.msk.f32.mxu1 %vm1442_vm0, %v1441_v4 }
 0x2d9   : > { %v433_v30 = vpop.f32.mrf.mxu1 }
 0x2da   : > { %v434_v31 = vadd.f32 %v1199_v29, %v433_v30 }
 0x2db   : > { %v1305_v32 = vpop.f32.mrf.mxu1 }
 0x2dc   : > { %v437_v33 = vmax.f32 %v434_v31, 0.0  ;;  %v1208_v31 = vld [vmem:[%s1742_s2 + $0x4] ss:$0 sm:$0xff] }
 0x2de   : > { %1309 = vmatmul.mubr.msk.f32.vlgmr.msra.gmra.mxu0 %vm284_vm2, %v437_v33 }
 0x2df   : > { %1312 = vmatpush3.msra.mxu0 %v1634_v34  ;;  %1313 = vmatprep.mubr.msk.f32.mxu0 %vm1442_vm0, %v1441_v4 }
 0x2e0   : > { %1316 = vmatprep.subr.mxu0 %v1441_v4 }
 0x39e   : > { %v514_v36 = vpop.f32.mrf.mxu0 }
 0x39f   : > { %v515_v37 = vadd.f32 %v1201_v35, %v514_v36 }
 0x3a0   : > { %v1310_v38 = vpop.f32.mrf.mxu0 }
 0x3a1   : > { %v518_v39 = vmax.f32 %v515_v37, 0.0 }
 0x3a3   : > { %1314 = vmatmul.mubr.msk.f32.vlgmr.msra.gmra.mxu0 %vm284_vm2, %v518_v39 }
 0x3a4   : > { %1326 = vmatprep.mubr.msk.f32.mxu0 %vm1442_vm0, %v1441_v4  ;;  %1317 = vmatpush3.msra.mxu0 %v661_v45 }
 0x3a5   : > { %1318 = vmatprep.subr.mxu0 %v1441_v4 }
 0x3a6   : > { %1319 = vmatpush3.msra.mxu0 %v659_v46 }
 0x3a7   : > { %1320 = vmatprep.subr.mxu0 %v1441_v4 }
 0x463   : > { %v595_v41 = vpop.f32.mrf.mxu0 }
 0x464   : > { %v596_v42 = vadd.f32 %v1654_v40, %v595_v41 }
 0x465   : > { %v1315_v43 = vpop.f32.mrf.mxu0 }
 0x466   : > { %v1205_v44 = vmul.f32 -1.442695, %v596_v42 }
 0x468   : > { %1408 = vpow2.f32 %v1205_v44 }
 0x475   : > { %v1409_v47 = vpop.eup %1408 }
 0x476   : > { %v602_v48 = vadd.f32 1.0, %v1409_v47 }
 0x478   : > { %1410 = vrcp.f32 %v602_v48 }
 0x485   : > { %v1411_v49 = vpop.eup %1410 }
 0x486   : > { %609 = vrot.lane.b32.xlu0 %v1411_v49, %s1446_s22  ;;  %606 = vrot.lane.b32.xlu1 %v1411_v49, %s1447_s23  ;;  %1089 = vst.msk [vmem:[%s1660_s24] sm:$0xff] %vm633_vm4, %v1411_v49 }
 0x48a   : > { %615 = vrot.lane.b32.xlu0 %v1411_v49, %s1448_s25  ;;  %612 = vrot.lane.b32.xlu1 %v1411_v49, %s1449_s26 }
 0x48d   : > { %v1131_v46 = vld [vmem:[%s1660_s24] sm:$0xff] (%p1502_p4) }
 0x48e   : > { %624 = vrot.lane.b32.xlu0 %v1411_v49, %s1450_s27  ;;  %618 = vrot.lane.b32.xlu1 %v1411_v49, %s1451_s28  ;;  %1132 = vst [vmem:[%s1100_s17] sm:$0xff] (%p1502_p4), %v1131_v46 }
 0x492   : > { %627 = vrot.lane.b32.xlu0 %v1411_v49, %s1452_s12  ;;  %621 = vrot.lane.b32.xlu1 %v1411_v49, %s1453_s29 }
 0x496   : > { %630 = vrot.lane.b32.xlu1 %v1411_v49, %s1454_s30  ;;  %656 = vrot.lane.b32.xlu0 %v1514_v1, %s1445_s11 }
 0x49a   : > { %654 = vrot.lane.b32.xlu1 %v1526_v3, %s1445_s11  ;;  %652 = vrot.lane.b32.xlu0 %v1539_v5, %s1445_s11 }
 0x49e   : > { %843 = vrot.lane.b32.xlu1 %v1574_v18, %s1455_s4  ;;  %841 = vrot.lane.b32.xlu0 %v1580_v19, %s1455_s4 }
 0x4a2   : > { %839 = vrot.lane.b32.xlu1 %v1589_v20, %s1455_s4  ;;  %837 = vrot.lane.b32.xlu0 %v1596_v21, %s1455_s4 }
 0x4a6   : > { %835 = vrot.lane.b32.xlu1 %v1603_v22, %s1455_s4  ;;  %833 = vrot.lane.b32.xlu0 %v1509_v0, %s1455_s4 }
 0x4aa   : > { %831 = vrot.lane.b32.xlu1 %v1521_v2, %s1455_s4  ;;  %829 = vrot.lane.b32.xlu0 %v1514_v1, %s1455_s4 }
 0x4ae   : > { %827 = vrot.lane.b32.xlu1 %v1526_v3, %s1455_s4  ;;  %825 = vrot.lane.b32.xlu0 %v1539_v5, %s1455_s4 }
 0x4b2   : > { %933 = vrot.lane.b32.xlu1 %v1539_v5, %s1456_s5  ;;  %v1210_v5 = vld [vmem:[%s1742_s2 + $0x5] ss:$0 sm:$0xff] }
 0x4f8   : > { %v610_v50 = vpop.permute.xlu0 %609  ;;  %v607_v51 = vpop.permute.xlu1 %606 }
 0x4f9   : > { %v634_v52 = vsel %vm633_vm4, %v1411_v49, %v607_v51 }
 0x4fa   : > { %v635_v55 = vsel %vm284_vm2, %v634_v52, %v610_v50 }
 0x4fc   : > { %v616_v53 = vpop.permute.xlu0 %615  ;;  %v613_v54 = vpop.permute.xlu1 %612 }
 0x4fd   : > { %v637_v56 = vsel %vm636_vm5, %v635_v55, %v613_v54 }
 0x4fe   : > { %v639_v59 = vsel %vm638_vm6, %v637_v56, %v616_v53 }
 0x500   : > { %v625_v57 = vpop.permute.xlu0 %624  ;;  %v619_v58 = vpop.permute.xlu1 %618 }
 0x501   : > { %v641_v60 = vsel %vm640_vm7, %v639_v59, %v619_v58 }
 0x504   : > { %v628_v61 = vpop.permute.xlu0 %627  ;;  %v622_v62 = vpop.permute.xlu1 %621 }
 0x505   : > { %v643_v63 = vsel %vm642_vm8, %v641_v60, %v622_v62 }
 0x506   : > { %v645_v6 = vsel %vm644_vm9, %v643_v63, %v625_v57 }
 0x507   : > { %v647_v7 = vsel %vm646_vm10, %v645_v6, %v628_v61 }
 0x508   : > { %v631_v8 = vpop.permute.xlu1 %630  ;;  %v657_v9 = vpop.permute.xlu0 %656 }
 0x509   : > { %v649_v10 = vsel %vm648_vm11, %v647_v7, %v631_v8  ;;  %1321 = vmatpush3.msra.mxu0 %v657_v9 }
 0x50a   : > { %v650_v13 = vsub.f32 %v649_v10, %v1550_v11  ;;  %1322 = vmatprep.subr.mxu0 %v1441_v4 }
 0x50c   : > { %v655_v14 = vpop.permute.xlu1 %654  ;;  %v653_v16 = vpop.permute.xlu0 %652  ;;  %v651_v17 = vmul.f32 %v650_v13, %v650_v13 }
 0x50d   : > { %1323 = vmatpush3.msra.mxu0 %v655_v14 }
 0x50e   : > { %1324 = vmatprep.subr.mxu0 %v1441_v4 }
 0x50f   : > { %1325 = vmatpush3.msra.mxu0 %v653_v16 }
 0x510   : > { %1327 = vmatmul.mubr.msk.f32.vlgmr.msra.gmra.mxu0 %vm205_vm1, %v651_v17  ;;  %1329 = vmatprep.subr.mxu0 %v1441_v4  ;;  %v844_v11 = vpop.permute.xlu1 %843 }
 0x511   : > { %1330 = vmatpush3.msra.mxu0 %v1561_v12  ;;  %1331 = vmatprep.mubr.msk.f32.mxu0 %vm1442_vm0, %v1441_v4  ;;  %v842_v12 = vpop.permute.xlu0 %841 }
 0x512   : > { %1357 = vmatprep.subr.mxu0 %v1441_v4  ;;  %1335 = vmatpush3.msra.mxu1 %v844_v11 }
 0x513   : > { %1336 = vmatprep.subr.mxu1 %v1441_v4 }
 0x514   : > { %1337 = vmatpush3.msra.mxu1 %v842_v12  ;;  %v840_v18 = vpop.permute.xlu1 %839 }
 0x515   : > { %1338 = vmatprep.subr.mxu1 %v1441_v4  ;;  %v838_v19 = vpop.permute.xlu0 %837 }
 0x516   : > { %1339 = vmatpush3.msra.mxu1 %v840_v18 }
 0x517   : > { %1340 = vmatprep.subr.mxu1 %v1441_v4 }
 0x518   : > { %1341 = vmatpush3.msra.mxu1 %v838_v19  ;;  %v836_v1 = vpop.permute.xlu1 %835 }
 0x519   : > { %1342 = vmatprep.subr.mxu1 %v1441_v4  ;;  %v834_v3 = vpop.permute.xlu0 %833 }
 0x51a   : > { %1343 = vmatpush3.msra.mxu1 %v836_v1 }
 0x51b   : > { %1344 = vmatprep.subr.mxu1 %v1441_v4 }
 0x51c   : > { %1345 = vmatpush3.msra.mxu1 %v834_v3  ;;  %v832_v22 = vpop.permute.xlu1 %831 }
 0x51d   : > { %1346 = vmatprep.subr.mxu1 %v1441_v4  ;;  %v830_v23 = vpop.permute.xlu0 %829 }
 0x51e   : > { %1347 = vmatpush3.msra.mxu1 %v832_v22 }
 0x51f   : > { %1348 = vmatprep.subr.mxu1 %v1441_v4 }
 0x520   : > { %1349 = vmatpush3.msra.mxu1 %v830_v23 }
 0x521   : > { %1350 = vmatprep.subr.mxu1 %v1441_v4  ;;  %v826_v25 = vpop.permute.xlu0 %825 }
 0x5d0   : > { %v736_v0 = vpop.f32.mrf.mxu0 }
 0x5d1   : > { %v740_v2 = vadd.f32 %v736_v0, %v1568_v15  ;;  %v828_v15 = vpop.permute.xlu1 %827 }
 0x5d2   : > { %v1328_v20 = vpop.f32.mrf.mxu0  ;;  %1351 = vmatpush3.msra.mxu1 %v828_v15 }
 0x5d3   : > { %v741_v21 = vmax.f32 %v740_v2, 0.0  ;;  %1352 = vmatprep.subr.mxu1 %v1441_v4 }
 0x5d4   : > { %1353 = vmatpush3.msra.mxu1 %v826_v25 }
 0x5d5   : > { %1332 = vmatmul.mubr.msk.f32.vlgmr.msra.gmra.mxu0 %vm284_vm2, %v741_v21  ;;  %v934_v26 = vpop.permute.xlu1 %933 }
 0x5d6   : > { %1359 = vmatprep.mubr.msk.f32.mxu0 %vm1442_vm0, %v1441_v4  ;;  %1358 = vmatpush3.msra.mxu0 %v934_v26 }
 0x5d7   : > { %1362 = vmatprep.subr.mxu0 %v1441_v4 }
 0x695   : > { %v811_v27 = vpop.f32.mrf.mxu0 }
 0x696   : > { %v812_v28 = vadd.f32 %v1624_v24, %v811_v27 }
 0x697   : > { %v1333_v29 = vpop.f32.mrf.mxu0 }
 0x698   : > { %v815_v30 = vmax.f32 %v812_v28, 0.0 }
 0x69a   : > { %1355 = vmatmul.mubr.msk.f32.vlgmr.msra.gmra.mxu1 %vm363_vm3, %v815_v30 }
 0x75a   : > { %v924_v32 = vpop.f32.mrf.mxu1 }
 0x75b   : > { %v925_v33 = vadd.f32 %v1208_v31, %v924_v32 }
 0x75c   : > { %v1356_v35 = vpop.f32.mrf.mxu1 }
 0x75d   : > { %v928_v36 = vmax.f32 %v925_v33, 0.0 }
 0x75f   : > { %1360 = vmatmul.mubr.msk.f32.vlgmr.msra.gmra.mxu0 %vm284_vm2, %v928_v36 }
 0x760   : > { %1363 = vmatpush3.msra.mxu0 %v1634_v34  ;;  %1364 = vmatprep.mubr.msk.f32.mxu0 %vm1442_vm0, %v1441_v4 }
 0x81f   : > { %v1005_v24 = vpop.f32.mrf.mxu0 }
 0x820   : > { %v1006_v37 = vadd.f32 %v1210_v5, %v1005_v24 }
 0x821   : > { %v1361_v38 = vpop.f32.mrf.mxu0 }
 0x822   : > { %v1009_v39 = vmax.f32 %v1006_v37, 0.0 }
 0x824   : > { %1365 = vmatmul.mubr.msk.f32.vlgmr.msra.gmra.mxu0 %vm284_vm2, %v1009_v39 }
 0x8e4   : > { %v1079_v41 = vpop.f32.mrf.mxu0 }
 0x8e5   : > { %v1080_v42 = vadd.f32 %v1654_v40, %v1079_v41 }
 0x8e6   : > { %v1366_v43 = vpop.f32.mrf.mxu0 }
 0x8e7   : > { %v1213_v44 = vmul.f32 -1.442695, %v1080_v42 }
 0x8e9   : > { %1412 = vpow2.f32 %v1213_v44 }
 0x8f6   : > { %v1413_v34 = vpop.eup %1412 }
 0x8f7   : > { %v1086_v45 = vadd.f32 1.0, %v1413_v34 }
 0x8f9   : > { %1414 = vrcp.f32 %v1086_v45 }
 0x903   : > { %1098 = sbr.rel (!%p1502_p4) target bundleno = 2320 (0x910), region = 36 }
 0x906   : > { %v1415_v4 = vpop.eup %1414 }
 0x907   : > { %1214 = vst.msk [vmem:[%s1660_s24 + $0x8] sm:$0xff] %vm633_vm4, %v1415_v4 }
 0x90e   : > { %v1133_v47 = vld [vmem:[%s1660_s24 + $0x8] sm:$0xff] }
 0x90f   : > { %1134 = vst [vmem:[%s1100_s17 + $0x18] sm:$0xff] %v1133_v47 }
 0x910 PF: > { %p10_p8 = scmp.ge.s32.totalorder %s1492_s16, 5   ;;  %s1745_s12 = smov %s1434_s13 }
 0x911   : > { %s1746_s13 = smov %s1500_s19  ;;  %s1747_s14 = smov %s1492_s16 }
 0x912   :  { %12 = sbr.rel (!%p10_p8) target bundleno = 2 (0x2), region = 101 }

</bundles_post_ra>
